<compile_context>
chip_gen: v5e
topology: v5e:2x2
jax: 0.10.0
libtpu: 0.0.40
codegen_flags: <defaults>
</compile_context>

<pallas_src>
import math
import jax
import jax.numpy as jnp
from jax.experimental import pallas as pl
from jax.experimental.pallas import tpu as pltpu

_INV_SQRT2 = 0.7071067811865476  # 1/sqrt(2)


def _gelu_exact(x):
    # PyTorch nn.GELU() default = exact (erf-based) GELU, computed in f32.
    return 0.5 * x * (1.0 + jax.lax.erf(x * jnp.float32(_INV_SQRT2)))


def _round_up(x, m):
    return ((x + m - 1) // m) * m


# --------------------------------------------------------------------------
# Kernel: grid = (M tiles, N tiles, K tiles), K innermost ("arbitrary").
# o_ref is the f32 accumulator (block index ignores k => VMEM-resident).
# --------------------------------------------------------------------------
def expert_kernel(x_ref, w_ref, b_ref, o_ref):
    k = pl.program_id(2)

    @pl.when(k == 0)
    def _():
        o_ref[...] = jnp.zeros_like(o_ref)

    # (tm, tk) @ (tk, tn) on the MXU with f32 accumulation.  Weight was
    # pre-transposed once in the wrapper, so no in-kernel transpose.
    o_ref[...] += jnp.dot(x_ref[...], w_ref[...],
                          preferred_element_type=jnp.float32)

    @pl.when(k == pl.num_programs(2) - 1)
    def _():
        y = o_ref[...] + b_ref[...]          # (tm, tn) + (1, tn), f32
        o_ref[...] = _gelu_exact(y)


# --------------------------------------------------------------------------
# One-time weight/bias preparation (hoisted out of the per-call path).
# --------------------------------------------------------------------------
def prepare_expert_params(weight, bias, *, tn=512, tk=1024,
                          compute_dtype=jnp.bfloat16):
    """weight: (N, K) torch nn.Linear layout; bias: (N,).

    Returns (w_prep, b_prep, meta) where w_prep is (K_pad, N_pad) in
    compute_dtype, b_prep is (1, N_pad) f32, meta carries (N, tn, tk).
    """
    N, K = weight.shape
    tn = min(_round_up(tn, 128), _round_up(N, 128))
    tk = min(_round_up(tk, 128), _round_up(K, 128))
    N_pad = _round_up(N, tn)
    K_pad = _round_up(K, tk)

    w_t = jnp.pad(weight, ((0, N_pad - N), (0, K_pad - K))).T   # (K_pad, N_pad)
    w_prep = jnp.asarray(w_t, dtype=compute_dtype)
    b_prep = jnp.pad(bias, (0, N_pad - N)).reshape(1, N_pad).astype(jnp.float32)
    return w_prep, b_prep, (N, tn, tk)


# --------------------------------------------------------------------------
# Per-call wrapper.
# --------------------------------------------------------------------------
def expert_layer(x, w_prep, b_prep, meta, *, tm=512):
    """x: (M, K) f32; w_prep/b_prep/meta from prepare_expert_params."""
    N, tn, tk = meta
    K_pad, N_pad = w_prep.shape
    M, K = x.shape
    assert K <= K_pad, "input feature dim larger than prepared weight"
    compute_dtype = w_prep.dtype

    tm = min(_round_up(tm, 8), _round_up(M, 8))
    # v7x megacore: ensure >= 2 iterations on the parallel (i, j) axes when the
    # problem is big enough to split, so both TensorCores get work.
    if _round_up(M, tm) // tm == 1 and N_pad // tn == 1 and M > 8:
        tm = _round_up(pl.cdiv(M, 2), 8)
    M_pad = _round_up(M, tm)

    # Pad x per call only when needed; zero-padded K columns contribute 0.
    x_p = x
    if M_pad != M or K_pad != K:
        x_p = jnp.pad(x, ((0, M_pad - M), (0, K_pad - K)))
    x_p = jnp.asarray(x_p, dtype=compute_dtype)

    grid = (M_pad // tm, N_pad // tn, K_pad // tk)

    # Generation-aware VMEM budget: footprint of double-buffered tiles plus
    # headroom, capped at ~85% of physical VMEM (v7x 64 MiB vs v5e/v6e 128 MiB).
    in_bytes = jnp.dtype(compute_dtype).itemsize
    footprint = (2 * (tm * tk + tk * tn) * in_bytes   # x / W tiles (2 buffers)
                 + 2 * (tm * tn) * 4                  # resident f32 output tile
                 + 2 * tn * 4)                        # bias slice
    try:
        vmem_cap = int(pltpu.get_tpu_info().vmem_capacity_bytes)
    except Exception:
        vmem_cap = 64 * 1024 * 1024
    vmem_limit = int(min(int(0.85 * vmem_cap),
                         max(footprint + (4 << 20), 32 << 20)))

    out_p = pl.pallas_call(
        expert_kernel,
        out_shape=jax.ShapeDtypeStruct((M_pad, N_pad), jnp.float32),
        grid_spec=pltpu.PrefetchScalarGridSpec(
            num_scalar_prefetch=0,
            grid=grid,
            in_specs=[
                pl.BlockSpec((tm, tk), lambda i, j, k: (i, k)),   # x tile
                pl.BlockSpec((tk, tn), lambda i, j, k: (k, j)),   # W^T tile
                pl.BlockSpec((1, tn), lambda i, j, k: (0, j)),    # bias slice
            ],
            out_specs=pl.BlockSpec((tm, tn), lambda i, j, k: (i, j)),
        ),
        compiler_params=pltpu.CompilerParams(
            dimension_semantics=("parallel", "parallel", "arbitrary"),
            vmem_limit_bytes=vmem_limit,
        ),
    )(x_p, w_prep, b_prep)

    return out_p[:M, :N].astype(x.dtype)


def expert_layer_ref(x, weight, bias):
    # Pure-JAX reference (matches torch: x @ W.T + b, exact GELU), f32.
    y = x @ weight.T + bias
    return 0.5 * y * (1.0 + jax.lax.erf(y * jnp.float32(_INV_SQRT2)))


if __name__ == "__main__":
    key = jax.random.PRNGKey(0)

    # ---- Test 1: tiny shape, f32 compute path, strict torch parity --------
    input_size, output_size, batch = 32, 32, 8
    k1, k2, k3, key = jax.random.split(key, 4)
    bound = 1.0 / math.sqrt(input_size)
    w1 = jax.random.uniform(k2, (output_size, input_size),
                            minval=-bound, maxval=bound, dtype=jnp.float32)
    b1 = jax.random.uniform(k3, (output_size,),
                            minval=-bound, maxval=bound, dtype=jnp.float32)
    x1 = jax.random.normal(k1, (batch, input_size), dtype=jnp.float32)

    wp1, bp1, meta1 = prepare_expert_params(w1, b1, compute_dtype=jnp.float32)
    out1 = jax.block_until_ready(expert_layer(x1, wp1, bp1, meta1))
    ref1 = expert_layer_ref(x1, w1, b1)
    assert out1.shape == (batch, output_size)
    assert jnp.allclose(out1, ref1, atol=1e-5, rtol=1e-5), "f32 path mismatch"

    # ---- Test 2: multi-tile M/N/K with padding, bf16 MXU operands ---------
    M2, K2, N2 = 200, 384, 300
    k1, k2, k3, key = jax.random.split(key, 4)
    bound = 1.0 / math.sqrt(K2)
    w2 = jax.random.uniform(k2, (N2, K2), minval=-bound, maxval=bound,
                            dtype=jnp.float32)
    b2 = jax.random.uniform(k3, (N2,), minval=-bound, maxval=bound,
                            dtype=jnp.float32)
    x2 = jax.random.normal(k1, (M2, K2), dtype=jnp.float32)

    wp2, bp2, meta2 = prepare_expert_params(w2, b2, tn=128, tk=128,
                                            compute_dtype=jnp.bfloat16)
    out2 = jax.block_until_ready(expert_layer(x2, wp2, bp2, meta2, tm=64))
    ref2 = expert_layer_ref(x2, w2, b2)
    assert out2.shape == (M2, N2)
    # bf16 operands => relaxed tolerance (accumulation is still f32).
    assert jnp.allclose(out2, ref2, atol=3e-2, rtol=3e-2), "bf16 path mismatch"

    print("KERNEL_OK")
</pallas_src>

<mosaic_0001>
module attributes {stable_mosaic.version = 11 : i64} {
  func.func @expert_kernel(%arg0: i32, %arg1: i32, %arg2: i32, %arg3: memref<8x128xf32, #tpu.memory_space<vmem>>, %arg4: memref<128x128xf32, #tpu.memory_space<vmem>>, %arg5: memref<1x128xf32, #tpu.memory_space<vmem>>, %arg6: memref<8x128xf32, #tpu.memory_space<vmem>>) attributes {dimension_semantics = [#tpu.dimension_semantics<parallel>, #tpu.dimension_semantics<parallel>, #tpu.dimension_semantics<arbitrary>], iteration_bounds = array<i64: 1, 1, 1>, scalar_prefetch = 0 : i64, scratch_operands = 0 : i64, tpu.core_type = #tpu.core_type<tc>, window_params = [{transform_indices = @transform_0, window_bounds = array<i64: 8, 128>}, {transform_indices = @transform_1, window_bounds = array<i64: 128, 128>}, {transform_indices = @transform_2, window_bounds = array<i64: 1, 128>}, {transform_indices = @transform_3, window_bounds = array<i64: 8, 128>}]} {
    %c0_i32 = arith.constant 0 : i32
    %0 = arith.cmpi eq, %arg2, %c0_i32 : i32
    %1 = arith.extui %0 : i1 to i32
    %c0_i32_0 = arith.constant 0 : i32
    %2 = arith.cmpi ne, %1, %c0_i32_0 : i32
    scf.if %2 {
      %cst_10 = arith.constant 0.000000e+00 : f32
      %12 = vector.broadcast %cst_10 : f32 to vector<8x128xf32>
      %c0_11 = arith.constant 0 : index
      %c0_12 = arith.constant 0 : index
      %13 = vector.load %arg6[%c0_11, %c0_12] : memref<8x128xf32, #tpu.memory_space<vmem>>, vector<8x128xf32>
      tpu.vector_store %arg6[%c0_11, %c0_12], %12 {strides = array<i32>} : memref<8x128xf32, #tpu.memory_space<vmem>>, vector<8x128xf32>,
    } else {
    }
    %c0 = arith.constant 0 : index
    %c0_1 = arith.constant 0 : index
    %3 = vector.load %arg6[%c0, %c0_1] : memref<8x128xf32, #tpu.memory_space<vmem>>, vector<8x128xf32>
    %c0_2 = arith.constant 0 : index
    %c0_3 = arith.constant 0 : index
    %4 = vector.load %arg3[%c0_2, %c0_3] : memref<8x128xf32, #tpu.memory_space<vmem>>, vector<8x128xf32>
    %c0_4 = arith.constant 0 : index
    %c0_5 = arith.constant 0 : index
    %5 = vector.load %arg4[%c0_4, %c0_5] : memref<128x128xf32, #tpu.memory_space<vmem>>, vector<128x128xf32>
    %cst = arith.constant dense<0.000000e+00> : vector<8x128xf32>
    %6 = tpu.matmul %4, %5, %cst {dimension_numbers = #tpu.dot_dimension_numbers<[1], [0], [0], [1], [0, 0, 1, 1], [], []>} : vector<8x128xf32>, vector<128x128xf32>, vector<8x128xf32> -> vector<8x128xf32>
    %7 = arith.addf %3, %6 : vector<8x128xf32>
    %c0_6 = arith.constant 0 : index
    %c0_7 = arith.constant 0 : index
    %8 = vector.load %arg6[%c0_6, %c0_7] : memref<8x128xf32, #tpu.memory_space<vmem>>, vector<8x128xf32>
    tpu.vector_store %arg6[%c0_6, %c0_7], %7 {strides = array<i32>} : memref<8x128xf32, #tpu.memory_space<vmem>>, vector<8x128xf32>,
    %c0_i32_8 = arith.constant 0 : i32
    %9 = arith.cmpi eq, %arg2, %c0_i32_8 : i32
    %10 = arith.extui %9 : i1 to i32
    %c0_i32_9 = arith.constant 0 : i32
    %11 = arith.cmpi ne, %10, %c0_i32_9 : i32
    scf.if %11 {
      %c0_10 = arith.constant 0 : index
      %c0_11 = arith.constant 0 : index
      %12 = vector.load %arg6[%c0_10, %c0_11] : memref<8x128xf32, #tpu.memory_space<vmem>>, vector<8x128xf32>
      %c0_12 = arith.constant 0 : index
      %c0_13 = arith.constant 0 : index
      %13 = vector.load %arg5[%c0_12, %c0_13] : memref<1x128xf32, #tpu.memory_space<vmem>>, vector<1x128xf32>
      %14 = vector.broadcast %13 : vector<1x128xf32> to vector<8x128xf32>
      %15 = arith.addf %12, %14 : vector<8x128xf32>
      %cst_14 = arith.constant 5.000000e-01 : f32
      %16 = vector.broadcast %cst_14 : f32 to vector<8x128xf32>
      %17 = arith.mulf %16, %15 : vector<8x128xf32>
      %cst_15 = arith.constant 0.707106769 : f32
      %18 = vector.broadcast %cst_15 : f32 to vector<8x128xf32>
      %19 = arith.mulf %15, %18 : vector<8x128xf32>
      %20 = math.erf %19 : vector<8x128xf32>
      %cst_16 = arith.constant 1.000000e+00 : f32
      %21 = vector.broadcast %cst_16 : f32 to vector<8x128xf32>
      %22 = arith.addf %21, %20 : vector<8x128xf32>
      %23 = arith.mulf %17, %22 : vector<8x128xf32>
      %c0_17 = arith.constant 0 : index
      %c0_18 = arith.constant 0 : index
      %24 = vector.load %arg6[%c0_17, %c0_18] : memref<8x128xf32, #tpu.memory_space<vmem>>, vector<8x128xf32>
      tpu.vector_store %arg6[%c0_17, %c0_18], %23 {strides = array<i32>} : memref<8x128xf32, #tpu.memory_space<vmem>>, vector<8x128xf32>,
    } else {
    }
    return
  }
  func.func @transform_0(%arg0: i32, %arg1: i32, %arg2: i32) -> (i32, i32) {
    %c0_i32 = arith.constant 0 : i32
    return %arg0, %arg2 : i32, i32
  }
  func.func @transform_1(%arg0: i32, %arg1: i32, %arg2: i32) -> (i32, i32) {
    %c0_i32 = arith.constant 0 : i32
    return %arg2, %arg1 : i32, i32
  }
  func.func @transform_2(%arg0: i32, %arg1: i32, %arg2: i32) -> (i32, i32) {
    %c0_i32 = arith.constant 0 : i32
    %c0_i32_0 = arith.constant 0 : i32
    return %c0_i32, %arg1 : i32, i32
  }
  func.func @transform_3(%arg0: i32, %arg1: i32, %arg2: i32) -> (i32, i32) {
    %c0_i32 = arith.constant 0 : i32
    return %arg0, %arg1 : i32, i32
  }
}

</mosaic_0001>

<bundles_post_ra>
// kernel: tpu_custom_call.1
= control target key start
LH: loop header
LB: loop body
LE: loop exit
PB: predicated region body
PF: predicated region fallthrough
CT: control target
= control target key end

     0   :  { %8 = vsyncpa [#allocation3], 0  ;;  %s287_s0 = inlined_call_operand.hbm [shape: f32[8,128], index: 0, kind: input, shape index: {}]   ;;  %s288_s1 = inlined_call_operand.hbm [shape: f32[128,128], index: 1, kind: input, shape index: {}]   ;;  %s289_s2 = inlined_call_operand.vmem [shape: f32[1,128], index: 2, kind: input, shape index: {}]   ;;  %s290_s3 = inlined_call_operand.hbm [shape: f32[8,128], index: 3, kind: output, shape index: {}]  }
   0x1   :  { %9 = vsyncpa [#allocation6], 0 }
   0x2   :  { %10 = vsyncpa [#allocation4], 0  ;;  %s16_s14 = sshll.u32 %s287_s0, 4  ;;  %s250_s15 = smov [#allocation2]   ;;  %s17_s14 = int_to_ptr.hbm [resolvable:$true] %s16_s14 }
   0x3   :  { %s18_s16 = sshll.u32 %s250_s15, 4  ;;  %s26_s19 = sshll.u32 %s288_s1, 4  ;;  %s19_s16 = int_to_ptr.vmem [resolvable:$true] %s18_s16  ;;  %s27_s19 = int_to_ptr.hbm [resolvable:$true] %s26_s19 }
   0x4   :  { %21 = dma.hbm_to_vmem [thread:$0]  %s17_s14, 128, %s19_s16, [#allocation3]  }
   0x5   :  { %s251_s20 = smov [#allocation5]   ;;  %s252_s22 = smov 128  }
   0x6   :  { %s28_s21 = sshll.u32 %s251_s20, 4  ;;  %s253_s23 = smov 8   ;;  %s29_s21 = int_to_ptr.vmem [resolvable:$true] %s28_s21 }
   0x7   :  { %34 = dma.hbm_to_vmem [thread:$0]  %s27_s19, 2048, %s29_s21, [#allocation6], %s252_s22, %s252_s22, %s253_s23  }
   0x8   :  { %244 = dma.done.wait [#allocation3], 128  }
   0x9   :  { %245 = vsyncadd [#allocation3], 4294967168 }
   0xa   :  { %246 = dma.done.wait [#allocation6], 2048  }
   0xb   :  { %247 = vsyncadd [#allocation6], 4294965248  ;;  %v67_v0 = vld [vmem:[#allocation5 + $0x78] sm:$0xff]  ;;  %v66_v1 = vld [vmem:[#allocation5 + $0x70] sm:$0xff]  ;;  %s151_s27 = sshll.u32 %s290_s3, 4  ;;  %s152_s27 = int_to_ptr.hbm [resolvable:$true] %s151_s27 }
   0xc   :  { %68 = vmatpush.msra.mxu0 %v67_v0  ;;  %v65_v2 = vld [vmem:[#allocation5 + $0x68] sm:$0xff]  ;;  %v64_v3 = vld [vmem:[#allocation5 + $0x60] sm:$0xff]  ;;  %v63_v4 = vld [vmem:[#allocation5 + $0x58] sm:$0xff] }
   0xd   :  { %v62_v5 = vld [vmem:[#allocation5 + $0x50] sm:$0xff]  ;;  %v61_v6 = vld [vmem:[#allocation5 + $0x48] sm:$0xff]  ;;  %v60_v7 = vld [vmem:[#allocation5 + $0x40] sm:$0xff] }
   0xe   :  { %69 = vmatpush.msra.mxu0 %v66_v1  ;;  %v59_v8 = vld [vmem:[#allocation5 + $0x38] sm:$0xff]  ;;  %v58_v9 = vld [vmem:[#allocation5 + $0x30] sm:$0xff]  ;;  %v57_v10 = vld [vmem:[#allocation5 + $0x28] sm:$0xff] }
   0xf   :  { %v56_v11 = vld [vmem:[#allocation5 + $0x20] sm:$0xff]  ;;  %v55_v12 = vld [vmem:[#allocation5 + $0x18] sm:$0xff]  ;;  %v54_v13 = vld [vmem:[#allocation5 + $0x10] sm:$0xff] }
  0x10   :  { %70 = vmatpush.msra.mxu0 %v65_v2  ;;  %v53_v14 = vld [vmem:[#allocation5 + $0x8] sm:$0xff]  ;;  %v52_v15 = vld [vmem:[#allocation5] sm:$0xff]  ;;  %v51_v16 = vld [vmem:[#allocation2] sm:$0xff] }
  0x11   :  { %v169_v17 = vld [vmem:[%s289_s2] ss:$0 sm:$0xff]  ;;  %s254_s2 = smov [#allocation7]  }
  0x12   :  { %71 = vmatpush.msra.mxu0 %v64_v3  ;;  %s149_s24 = sshll.u32 %s254_s2, 4  ;;  %s150_s24 = int_to_ptr.vmem [resolvable:$true] %s149_s24 }
  0x14   :  { %72 = vmatpush.msra.mxu0 %v63_v4 }
  0x16   :  { %73 = vmatpush.msra.mxu0 %v62_v5 }
  0x18   :  { %74 = vmatpush.msra.mxu0 %v61_v6 }
  0x1a   :  { %75 = vmatpush.msra.mxu0 %v60_v7 }
  0x1c   :  { %76 = vmatpush.msra.mxu0 %v59_v8 }
  0x1e   :  { %77 = vmatpush.msra.mxu0 %v58_v9 }
  0x20   :  { %78 = vmatpush.msra.mxu0 %v57_v10 }
  0x22   :  { %79 = vmatpush.msra.mxu0 %v56_v11 }
  0x24   :  { %80 = vmatpush.msra.mxu0 %v55_v12 }
  0x26   :  { %81 = vmatpush.msra.mxu0 %v54_v13 }
  0x28   :  { %82 = vmatpush.msra.mxu0 %v53_v14 }
  0x2a   :  { %83 = vmatpush.msra.mxu0 %v52_v15 }
  0x2b   :  { %84 = vmatmul.f32.vlgmr.msra.gmra.mxu0 %v51_v16 }
  0xa8   :  { %v85_v18 = vpop.f32.mrf.mxu0 }
  0xa9   :  { %v98_v19 = vadd.f32 %v169_v17, %v85_v18 }
  0xab   :  { %v100_v20 = vmul.f32 0.70710677, %v98_v19  ;;  %v99_v56 = vmul.f32 0.5, %v98_v19 }
  0xad   :  { %v101_v21 = vmul.f32 %v100_v20, %v100_v20 }
  0xaf   :  { %v102_v22 = vmin.f32 %v101_v21, 16.0 }
  0xb1   :  { %v103_v23 = vmul.f32 2.1237322e-06, %v102_v22  ;;  %v114_v24 = vmul.f32 3.8918573e-05, %v102_v22 }
  0xb3   :  { %v104_v25 = vadd.f32 0.00028619796, %v103_v23  ;;  %v115_v26 = vadd.f32 0.001143296, %v114_v24 }
  0xb5   :  { %v105_v27 = vmul.f32 %v104_v25, %v102_v22  ;;  %v116_v28 = vmul.f32 %v115_v26, %v102_v22 }
  0xb7   :  { %v117_v29 = vadd.f32 0.014752088, %v116_v28  ;;  %v106_v30 = vadd.f32 0.0036580483, %v105_v27 }
  0xb9   :  { %v118_v31 = vmul.f32 %v117_v29, %v102_v22  ;;  %v107_v33 = vmul.f32 %v106_v30, %v102_v22 }
  0xbb   :  { %v119_v32 = vadd.f32 0.112945676, %v118_v31  ;;  %v108_v36 = vadd.f32 0.05243302, %v107_v33 }
  0xbd   :  { %v120_v34 = vmul.f32 %v119_v32, %v102_v22  ;;  %v109_v39 = vmul.f32 %v108_v36, %v102_v22 }
  0xbf   :  { %v121_v35 = vadd.f32 0.4994258, %v120_v34  ;;  %v110_v40 = vadd.f32 0.18741608, %v109_v39 }
  0xc1   :  { %v122_v37 = vmul.f32 %v121_v35, %v102_v22  ;;  %v111_v42 = vmul.f32 %v110_v40, %v102_v22 }
  0xc3   :  { %v123_v38 = vadd.f32 1.0, %v122_v37  ;;  %v112_v46 = vadd.f32 1.1283791, %v111_v42 }
  0xc5   :  { %170 = vrcp.f32 %v123_v38  ;;  %v135_v45 = vand.u32 2147483648, %v123_v38  ;;  %v133_v48 = vand.u32 2147483647, %v123_v38  ;;  %vm129_vm1 = vweird.f32 %v123_v38 }
  0xc6   :  { %v113_v51 = vmul.f32 %v112_v46, %v100_v20 }
  0xc7   :  { %v136_v50 = vor.u32 1.1754944e-38, %v135_v45  ;;  %vm134_vm3 = vcmp.eq.f32.partialorder %v133_v48, 8.507059e+37 }
  0xcb   :  { %v171_v41 = vpop.eup %170 }
  0xcc   :  { %v125_v43 = vmul.f32 %v171_v41, %v123_v38  ;;  %vm130_vm0 = vweird.f32 %v171_v41 }
  0xcd   :  { %vm131_vm2 = vmor %vm129_vm1, %vm130_vm0 }
  0xce   :  { %v126_v44 = vsub.f32 1.0, %v125_v43 }
  0xd0   :  { %v127_v47 = vmul.f32 %v171_v41, %v126_v44 }
  0xd2   :  { %v128_v49 = vadd.f32 %v171_v41, %v127_v47 }
  0xd4   :  { %v132_v52 = vsel %vm131_vm2, %v171_v41, %v128_v49 }
  0xd5   :  { %v137_v53 = vsel %vm134_vm3, %v136_v50, %v132_v52 }
  0xd6   :  { %v138_v54 = vmul.f32 %v137_v53, %v113_v51 }
  0xd8   :  { %v162_v55 = vclamps-f32 %v138_v54, 1.0 }
  0xda   :  { %v141_v57 = vadd.f32 1.0, %v162_v55 }
  0xdc   :  { %v142_v58 = vmul.f32 %v141_v57, %v99_v56 }
  0xde   :  { %143 = vst [vmem:[#allocation7] sm:$0xff] %v142_v58 }
  0xdf   :  { %154 = dma.vmem_to_hbm [thread:$0]  %s150_s24, 128, %s152_s27, [#allocation4]  }
  0xe0   :  { %248 = dma.done.wait [#allocation4], 128  }
  0xe1   :  { %249 = vsyncadd [#allocation4], 4294967168 }
  0xe2   :  { %159 = vsyncpa [#allocation3], 1 }
  0xe3   :  { %160 = vsyncpa [#allocation6], 1 }
  0xe4   :  { %161 = vsyncpa [#allocation4], 1 }

</bundles_post_ra>
